<compile_context>
chip_gen: v7x
topology: tpu7x:2x2x1
jax: 0.10.0
libtpu: 0.0.40
codegen_flags: <defaults>
</compile_context>

<pallas_src>
import jax
import jax.numpy as jnp
from jax.experimental import pallas as pl
from jax.experimental.pallas import tpu as pltpu

IN_FEATURES = 16 * 17        # 272
OUT_FEATURES = 4
OUT_T_ROWS = 8               # fc4 rows padded 4 -> 8 (sublane granule)
H1, H2, H3 = 256, 128, 64


def _round_up(n, m):
    return ((n + m - 1) // m) * m


def dqn_mlp_kernel(x_ref,
                   w1_ref, b1_ref,
                   w2_ref, b2_ref,
                   w3_ref, b3_ref,
                   w4t_ref, b4t_ref,
                   o_ref):
    # fc1 + ReLU : [TB, 272] @ [272, 256] + [1, 256]
    h = jnp.dot(x_ref[...].astype(jnp.bfloat16), w1_ref[...],
                preferred_element_type=jnp.float32)
    h = jnp.maximum(h + b1_ref[...], 0.0)
    # fc2 + ReLU : [TB, 256] @ [256, 128] + [1, 128]
    h = jnp.dot(h.astype(jnp.bfloat16), w2_ref[...],
                preferred_element_type=jnp.float32)
    h = jnp.maximum(h + b2_ref[...], 0.0)
    # fc3 + ReLU : [TB, 128] @ [128, 64] + [1, 64]
    h = jnp.dot(h.astype(jnp.bfloat16), w3_ref[...],
                preferred_element_type=jnp.float32)
    h = jnp.maximum(h + b3_ref[...], 0.0)
    # fc4, emitted transposed: q_T[j, b] = sum_k w4t[j, k] * h[b, k]
    # -> [8, TB] with batch on the dense 128-lane axis (lane-dense store).
    q_t = jax.lax.dot_general(
        w4t_ref[...], h.astype(jnp.bfloat16),
        dimension_numbers=(((1,), (1,)), ((), ())),
        preferred_element_type=jnp.float32)
    o_ref[...] = (q_t + b4t_ref[...]).astype(o_ref.dtype)


def _resident_spec(shape):
    # Constant block index -> fetched once, VMEM-resident for the whole grid;
    # Buffered(1) drops the useless second pipeline buffer for these operands.
    return pl.BlockSpec(shape, lambda i: (0, 0), pipeline_mode=pl.Buffered(1))


def _choose_tile_b(batch, tile_b):
    """Pick the batch tile.

    Small batches: one tile (latency-bound anyway).  Large batches: a big,
    128-aligned tile (lane-dense transposed output) capped so there are always
    >= 2 grid tiles, letting v7x shard the 'parallel' batch axis over both
    TensorCores (v5e/v6e just see one extra cheap grid step)."""
    if batch <= 256:
        return _round_up(max(batch, 1), 8)
    tb = min(_round_up(tile_b, 128), _round_up(pl.cdiv(batch, 2), 128))
    return max(tb, 128)


def dqn_forward(x, params, *, tile_b=1024):
    """x: [B, 272] float32. Returns [B, 4] float32 Q-values."""
    B, F = x.shape
    assert F == IN_FEATURES

    w1, b1 = params["w1"], params["b1"]
    w2, b2 = params["w2"], params["b2"]
    w3, b3 = params["w3"], params["b3"]
    w4t, b4t = params["w4t"], params["b4t"]

    tb = _choose_tile_b(B, tile_b)
    n_tiles = pl.cdiv(B, tb)
    bp = n_tiles * tb               # padded extent of the (tiny) output only

    in_specs = [
        # x: pipelined (double-buffered) over batch tiles.
        # TODO(synk): if v6e profiling shows exposed input DMA after the tile
        # bump, set pipeline_mode=pl.Buffered(3) on this spec only.
        pl.BlockSpec((tb, IN_FEATURES), lambda i: (i, 0)),
        _resident_spec(w1.shape), _resident_spec(b1.shape),
        _resident_spec(w2.shape), _resident_spec(b2.shape),
        _resident_spec(w3.shape), _resident_spec(b3.shape),
        _resident_spec(w4t.shape), _resident_spec(b4t.shape),
    ]
    out_spec = pl.BlockSpec((OUT_T_ROWS, tb), lambda i: (0, i))

    out_t = pl.pallas_call(
        dqn_mlp_kernel,
        out_shape=jax.ShapeDtypeStruct((OUT_T_ROWS, bp), jnp.float32),
        grid=(n_tiles,),
        in_specs=in_specs,
        out_specs=out_spec,
        compiler_params=pltpu.CompilerParams(
            dimension_semantics=("parallel",),   # shard batch tiles across TCs
        ),
    )(x, w1, b1, w2, b2, w3, b3, w4t, b4t)

    # TODO(synk): for tiny single-request serving (B~1..8) the call is bound by
    # re-DMAing ~230 KiB of weights per invocation; pin them across calls with
    # a cross-pallas_call prefetch (SEMAPHORE + VMEM outputs) or batch requests.
    return out_t[:OUT_FEATURES, :B].T


def init_params(key):
    """Deterministic init matching nn.Linear shapes.

    fc1..fc3 weights stored [in, out] bf16, biases [1, out] f32.
    fc4 stored transposed+padded: w4t [8, 64] bf16 (rows 4..7 zero),
    b4t [8, 1] f32 (rows 4..7 zero)."""
    dims = [(IN_FEATURES, H1), (H1, H2), (H2, H3), (H3, OUT_FEATURES)]
    params = {}
    keys = jax.random.split(key, len(dims) * 2)
    for i, (fan_in, fan_out) in enumerate(dims):
        bound = 1.0 / (fan_in ** 0.5)
        w = jax.random.uniform(keys[2 * i], (fan_in, fan_out),
                               minval=-bound, maxval=bound, dtype=jnp.float32)
        b = jax.random.uniform(keys[2 * i + 1], (fan_out,),
                               minval=-bound, maxval=bound, dtype=jnp.float32)
        if fan_out != OUT_FEATURES:
            params[f"w{i + 1}"] = w.astype(jnp.bfloat16)
            params[f"b{i + 1}"] = b.reshape(1, fan_out)          # f32
        else:
            wt = jnp.pad(w.T, ((0, OUT_T_ROWS - fan_out), (0, 0)))          # [8, 64]
            bt = jnp.pad(b.reshape(fan_out, 1), ((0, OUT_T_ROWS - fan_out), (0, 0)))
            params["w4t"] = wt.astype(jnp.bfloat16)
            params["b4t"] = bt                                   # [8, 1] f32
    return params


def reference_forward(x, params):
    """Pure-JAX reference mirroring the kernel's numerics (bf16 operands, f32 acc)."""
    def lin(h, w, b):
        hq = h.astype(jnp.bfloat16).astype(jnp.float32)
        return jnp.dot(hq, w.astype(jnp.float32),
                       precision=jax.lax.Precision.HIGHEST) + b
    h = jnp.maximum(lin(x, params["w1"], params["b1"]), 0.0)
    h = jnp.maximum(lin(h, params["w2"], params["b2"]), 0.0)
    h = jnp.maximum(lin(h, params["w3"], params["b3"]), 0.0)
    w4 = params["w4t"][:OUT_FEATURES].T                          # [64, 4]
    b4 = params["b4t"][:OUT_FEATURES].reshape(1, OUT_FEATURES)
    return lin(h, w4, b4)


if __name__ == "__main__":
    key = jax.random.PRNGKey(0)
    pkey, xkey1, xkey2 = jax.random.split(key, 3)
    params = init_params(pkey)

    # Small batch: single tile, latency path.
    B1 = 8
    x1 = jax.random.normal(xkey1, (B1, IN_FEATURES), dtype=jnp.float32)
    out1 = jax.block_until_ready(dqn_forward(x1, params))
    ref1 = reference_forward(x1, params)
    assert out1.shape == (B1, OUT_FEATURES)
    assert jnp.allclose(out1, ref1, atol=2e-2, rtol=2e-2)

    # Ragged batch, default tile (tb=256 -> 2 tiles): exercises the unpadded
    # boundary block and the >=2-tile megacore split.
    B2 = 300
    x2 = jax.random.normal(xkey2, (B2, IN_FEATURES), dtype=jnp.float32)
    out2 = jax.block_until_ready(dqn_forward(x2, params))
    ref2 = reference_forward(x2, params)
    assert out2.shape == (B2, OUT_FEATURES)
    assert jnp.allclose(out2, ref2, atol=2e-2, rtol=2e-2)

    # Same batch with an explicit smaller tile (3-step pipelined grid).
    out3 = jax.block_until_ready(dqn_forward(x2, params, tile_b=128))
    assert out3.shape == (B2, OUT_FEATURES)
    assert jnp.allclose(out3, ref2, atol=2e-2, rtol=2e-2)

    print("KERNEL_OK")
</pallas_src>

<mosaic_0001>
module attributes {stable_mosaic.version = 11 : i64} {
  func.func @dqn_mlp_kernel(%arg0: i32, %arg1: memref<8x272xf32, #tpu.memory_space<vmem>>, %arg2: memref<272x256xbf16, #tpu.memory_space<vmem>>, %arg3: memref<1x256xf32, #tpu.memory_space<vmem>>, %arg4: memref<256x128xbf16, #tpu.memory_space<vmem>>, %arg5: memref<1x128xf32, #tpu.memory_space<vmem>>, %arg6: memref<128x64xbf16, #tpu.memory_space<vmem>>, %arg7: memref<1x64xf32, #tpu.memory_space<vmem>>, %arg8: memref<8x64xbf16, #tpu.memory_space<vmem>>, %arg9: memref<8x1xf32, #tpu.memory_space<vmem>>, %arg10: memref<8x8xf32, #tpu.memory_space<vmem>>) attributes {dimension_semantics = [#tpu.dimension_semantics<parallel>], iteration_bounds = array<i64: 1>, scalar_prefetch = 0 : i64, scratch_operands = 0 : i64, tpu.core_type = #tpu.core_type<tc>, window_params = [{transform_indices = @transform_0, window_bounds = array<i64: 8, 272>}, {pipeline_mode = #tpu.pipeline_mode<synchronous>, transform_indices = @transform_1, window_bounds = array<i64: 272, 256>}, {pipeline_mode = #tpu.pipeline_mode<synchronous>, transform_indices = @transform_2, window_bounds = array<i64: 1, 256>}, {pipeline_mode = #tpu.pipeline_mode<synchronous>, transform_indices = @transform_3, window_bounds = array<i64: 256, 128>}, {pipeline_mode = #tpu.pipeline_mode<synchronous>, transform_indices = @transform_4, window_bounds = array<i64: 1, 128>}, {pipeline_mode = #tpu.pipeline_mode<synchronous>, transform_indices = @transform_5, window_bounds = array<i64: 128, 64>}, {pipeline_mode = #tpu.pipeline_mode<synchronous>, transform_indices = @transform_6, window_bounds = array<i64: 1, 64>}, {pipeline_mode = #tpu.pipeline_mode<synchronous>, transform_indices = @transform_7, window_bounds = array<i64: 8, 64>}, {pipeline_mode = #tpu.pipeline_mode<synchronous>, transform_indices = @transform_8, window_bounds = array<i64: 8, 1>}, {transform_indices = @transform_9, window_bounds = array<i64: 8, 8>}]} {
    %c0 = arith.constant 0 : index
    %c0_0 = arith.constant 0 : index
    %0 = vector.load %arg1[%c0, %c0_0] : memref<8x272xf32, #tpu.memory_space<vmem>>, vector<8x272xf32>
    %1 = arith.truncf %0 : vector<8x272xf32> to vector<8x272xbf16>
    %c0_1 = arith.constant 0 : index
    %c0_2 = arith.constant 0 : index
    %2 = vector.load %arg2[%c0_1, %c0_2] : memref<272x256xbf16, #tpu.memory_space<vmem>>, vector<272x256xbf16>
    %cst = arith.constant dense<0.000000e+00> : vector<8x256xf32>
    %3 = tpu.matmul %1, %2, %cst {dimension_numbers = #tpu.dot_dimension_numbers<[1], [0], [0], [1], [0, 0, 1, 1], [], []>} : vector<8x272xbf16>, vector<272x256xbf16>, vector<8x256xf32> -> vector<8x256xf32>
    %c0_3 = arith.constant 0 : index
    %c0_4 = arith.constant 0 : index
    %4 = vector.load %arg3[%c0_3, %c0_4] : memref<1x256xf32, #tpu.memory_space<vmem>>, vector<1x256xf32>
    %5 = vector.broadcast %4 : vector<1x256xf32> to vector<8x256xf32>
    %6 = arith.addf %3, %5 : vector<8x256xf32>
    %cst_5 = arith.constant 0.000000e+00 : f32
    %7 = vector.broadcast %cst_5 : f32 to vector<8x256xf32>
    %8 = arith.maximumf %6, %7 : vector<8x256xf32>
    %9 = arith.truncf %8 : vector<8x256xf32> to vector<8x256xbf16>
    %c0_6 = arith.constant 0 : index
    %c0_7 = arith.constant 0 : index
    %10 = vector.load %arg4[%c0_6, %c0_7] : memref<256x128xbf16, #tpu.memory_space<vmem>>, vector<256x128xbf16>
    %cst_8 = arith.constant dense<0.000000e+00> : vector<8x128xf32>
    %11 = tpu.matmul %9, %10, %cst_8 {dimension_numbers = #tpu.dot_dimension_numbers<[1], [0], [0], [1], [0, 0, 1, 1], [], []>} : vector<8x256xbf16>, vector<256x128xbf16>, vector<8x128xf32> -> vector<8x128xf32>
    %c0_9 = arith.constant 0 : index
    %c0_10 = arith.constant 0 : index
    %12 = vector.load %arg5[%c0_9, %c0_10] : memref<1x128xf32, #tpu.memory_space<vmem>>, vector<1x128xf32>
    %13 = vector.broadcast %12 : vector<1x128xf32> to vector<8x128xf32>
    %14 = arith.addf %11, %13 : vector<8x128xf32>
    %cst_11 = arith.constant 0.000000e+00 : f32
    %15 = vector.broadcast %cst_11 : f32 to vector<8x128xf32>
    %16 = arith.maximumf %14, %15 : vector<8x128xf32>
    %17 = arith.truncf %16 : vector<8x128xf32> to vector<8x128xbf16>
    %c0_12 = arith.constant 0 : index
    %c0_13 = arith.constant 0 : index
    %18 = vector.load %arg6[%c0_12, %c0_13] : memref<128x64xbf16, #tpu.memory_space<vmem>>, vector<128x64xbf16>
    %cst_14 = arith.constant dense<0.000000e+00> : vector<8x64xf32>
    %19 = tpu.matmul %17, %18, %cst_14 {dimension_numbers = #tpu.dot_dimension_numbers<[1], [0], [0], [1], [0, 0, 1, 1], [], []>} : vector<8x128xbf16>, vector<128x64xbf16>, vector<8x64xf32> -> vector<8x64xf32>
    %c0_15 = arith.constant 0 : index
    %c0_16 = arith.constant 0 : index
    %20 = vector.load %arg7[%c0_15, %c0_16] : memref<1x64xf32, #tpu.memory_space<vmem>>, vector<1x64xf32>
    %21 = vector.broadcast %20 : vector<1x64xf32> to vector<8x64xf32>
    %22 = arith.addf %19, %21 : vector<8x64xf32>
    %cst_17 = arith.constant 0.000000e+00 : f32
    %23 = vector.broadcast %cst_17 : f32 to vector<8x64xf32>
    %24 = arith.maximumf %22, %23 : vector<8x64xf32>
    %c0_18 = arith.constant 0 : index
    %c0_19 = arith.constant 0 : index
    %25 = vector.load %arg8[%c0_18, %c0_19] : memref<8x64xbf16, #tpu.memory_space<vmem>>, vector<8x64xbf16>
    %26 = arith.truncf %24 : vector<8x64xf32> to vector<8x64xbf16>
    %cst_20 = arith.constant dense<0.000000e+00> : vector<8x8xf32>
    %27 = tpu.matmul %25, %26, %cst_20 {dimension_numbers = #tpu.dot_dimension_numbers<[1], [1], [0], [0], [0, 0, 1, 0], [], []>} : vector<8x64xbf16>, vector<8x64xbf16>, vector<8x8xf32> -> vector<8x8xf32>
    %c0_21 = arith.constant 0 : index
    %c0_22 = arith.constant 0 : index
    %28 = vector.load %arg9[%c0_21, %c0_22] : memref<8x1xf32, #tpu.memory_space<vmem>>, vector<8x1xf32>
    %29 = vector.broadcast %28 : vector<8x1xf32> to vector<8x8xf32>
    %30 = arith.addf %27, %29 : vector<8x8xf32>
    %c0_23 = arith.constant 0 : index
    %c0_24 = arith.constant 0 : index
    %31 = vector.load %arg10[%c0_23, %c0_24] : memref<8x8xf32, #tpu.memory_space<vmem>>, vector<8x8xf32>
    tpu.vector_store %arg10[%c0_23, %c0_24], %30 {strides = array<i32>} : memref<8x8xf32, #tpu.memory_space<vmem>>, vector<8x8xf32>,
    return
  }
  func.func @transform_0(%arg0: i32) -> (i32, i32) {
    %c0_i32 = arith.constant 0 : i32
    %c0_i32_0 = arith.constant 0 : i32
    return %arg0, %c0_i32 : i32, i32
  }
  func.func @transform_1(%arg0: i32) -> (i32, i32) {
    %c0_i32 = arith.constant 0 : i32
    %c0_i32_0 = arith.constant 0 : i32
    %c0_i32_1 = arith.constant 0 : i32
    return %c0_i32, %c0_i32_0 : i32, i32
  }
  func.func @transform_2(%arg0: i32) -> (i32, i32) {
    %c0_i32 = arith.constant 0 : i32
    %c0_i32_0 = arith.constant 0 : i32
    %c0_i32_1 = arith.constant 0 : i32
    return %c0_i32, %c0_i32_0 : i32, i32
  }
  func.func @transform_3(%arg0: i32) -> (i32, i32) {
    %c0_i32 = arith.constant 0 : i32
    %c0_i32_0 = arith.constant 0 : i32
    %c0_i32_1 = arith.constant 0 : i32
    return %c0_i32, %c0_i32_0 : i32, i32
  }
  func.func @transform_4(%arg0: i32) -> (i32, i32) {
    %c0_i32 = arith.constant 0 : i32
    %c0_i32_0 = arith.constant 0 : i32
    %c0_i32_1 = arith.constant 0 : i32
    return %c0_i32, %c0_i32_0 : i32, i32
  }
  func.func @transform_5(%arg0: i32) -> (i32, i32) {
    %c0_i32 = arith.constant 0 : i32
    %c0_i32_0 = arith.constant 0 : i32
    %c0_i32_1 = arith.constant 0 : i32
    return %c0_i32, %c0_i32_0 : i32, i32
  }
  func.func @transform_6(%arg0: i32) -> (i32, i32) {
    %c0_i32 = arith.constant 0 : i32
    %c0_i32_0 = arith.constant 0 : i32
    %c0_i32_1 = arith.constant 0 : i32
    return %c0_i32, %c0_i32_0 : i32, i32
  }
  func.func @transform_7(%arg0: i32) -> (i32, i32) {
    %c0_i32 = arith.constant 0 : i32
    %c0_i32_0 = arith.constant 0 : i32
    %c0_i32_1 = arith.constant 0 : i32
    return %c0_i32, %c0_i32_0 : i32, i32
  }
  func.func @transform_8(%arg0: i32) -> (i32, i32) {
    %c0_i32 = arith.constant 0 : i32
    %c0_i32_0 = arith.constant 0 : i32
    %c0_i32_1 = arith.constant 0 : i32
    return %c0_i32, %c0_i32_0 : i32, i32
  }
  func.func @transform_9(%arg0: i32) -> (i32, i32) {
    %c0_i32 = arith.constant 0 : i32
    %c0_i32_0 = arith.constant 0 : i32
    return %c0_i32, %arg0 : i32, i32
  }
}

</mosaic_0001>

<bundles_post_ra>
// kernel: tpu_custom_call.1
= control target key start
LH: loop header
LB: loop body
LE: loop exit
PB: predicated region body
PF: predicated region fallthrough
CT: control target
= control target key end

     0   :  { %14 = vsyncpa [#allocation3], 0  ;;  %s1167_s0 = inlined_call_operand.vmem [shape: f32[8,272], index: 0, kind: input, shape index: {}]   ;;  %s1168_s1 = inlined_call_operand.hbm [shape: bf16[272,256], index: 1, kind: input, shape index: {}]   ;;  %s1169_s2 = inlined_call_operand.vmem [shape: f32[1,256], index: 2, kind: input, shape index: {}]   ;;  %s1170_s3 = inlined_call_operand.hbm [shape: bf16[256,128], index: 3, kind: input, shape index: {}]   ;;  %s1171_s4 = inlined_call_operand.vmem [shape: f32[1,128], index: 4, kind: input, shape index: {}]   ;;  %s1172_s5 = inlined_call_operand.vmem [shape: bf16[128,64], index: 5, kind: input, shape index: {}]   ;;  %s1173_s6 = inlined_call_operand.vmem [shape: f32[1,64], index: 6, kind: input, shape index: {}]   ;;  %s1174_s7 = inlined_call_operand.vmem [shape: bf16[8,64], index: 7, kind: input, shape index: {}]   ;;  %s1175_s8 = inlined_call_operand.vmem [shape: f32[8,1], index: 8, kind: input, shape index: {}]   ;;  %s1176_s9 = inlined_call_operand.hbm [shape: f32[8,8], index: 9, kind: output, shape index: {}]  }
   0x1   :  { %15 = vsyncpa [#allocation6], 0 }
   0x2   :  { %16 = vsyncpa [#allocation4], 0  ;;  %s1021_s30 = smov [#allocation2]   ;;  %s949_s13 = scalar_lea.hbm %s1168_s1, 4352 }
   0x3   :  { %s24_s10 = sshll.u32 %s1021_s30, 4  ;;  %p950_p0 = scmp.ne.s32.totalorder %s1168_s1, %s949_s13  ;;  %s25_s10 = int_to_ptr.vmem [resolvable:$true] %s24_s10 }
   0x4   :  { %p953_p1 = scmp.lt.u32.totalorder %s949_s13, %s1168_s1 }
   0x6   :  { %p955_p2 = pnand %p953_p1, %p950_p0 }
   0x8   :  { %958 = shalt.err (!%p955_p2)
}
   0x9   :  { %s959_s18 = scalar_lea.vmem %s25_s10, 4352  ;;  %p964_p4 = scmp.lt.s32.totalorder %s25_s10, %s25_s10 }
   0xa   :  { %p960_p3 = scmp.ne.s32.totalorder %s25_s10, %s959_s18  ;;  %p965_p5 = scmp.lt.s32.totalorder %s959_s18, %s959_s18 }
   0xc   :  { %p966_p6 = por %p965_p5, %p964_p4 }
   0xe   :  { %p967_p7 = pnand %p966_p6, %p960_p3 }
  0x10   :  { %970 = shalt.err (!%p967_p7)
}
  0x11   :  { %s1022_s19 = smov 128   ;;  %s1023_s20 = smov 8  }
  0x12   :  { %30 = dma.hbm_to_vmem [thread:$0]  %s1168_s1, 4352, %s25_s10, [#allocation3], %s1022_s19, %s1022_s19, %s1023_s20  }
  0x13   :  { %s1024_s23 = smov [#allocation5]   ;;  %s971_s27 = scalar_lea.hbm %s1170_s3, 2048 }
  0x14   :  { %s38_s24 = sshll.u32 %s1024_s23, 4  ;;  %p972_p8 = scmp.ne.s32.totalorder %s1170_s3, %s971_s27  ;;  %s39_s24 = int_to_ptr.vmem [resolvable:$true] %s38_s24 }
  0x15   :  { %p975_p9 = scmp.lt.u32.totalorder %s971_s27, %s1170_s3 }
  0x17   :  { %p977_p10 = pnand %p975_p9, %p972_p8 }
  0x19   :  { %980 = shalt.err (!%p977_p10)
}
  0x1a   :  { %s981_s12 = scalar_lea.vmem %s39_s24, 2048  ;;  %p986_p12 = scmp.lt.s32.totalorder %s39_s24, %s39_s24 }
  0x1b   :  { %p982_p11 = scmp.ne.s32.totalorder %s39_s24, %s981_s12  ;;  %p987_p13 = scmp.lt.s32.totalorder %s981_s12, %s981_s12 }
  0x1d   :  { %p988_p0 = por %p987_p13, %p986_p12 }
  0x1f   :  { %p989_p1 = pnand %p988_p0, %p982_p11 }
  0x21   :  { %992 = shalt.err (!%p989_p1)
}
  0x22   :  { %s1025_s1 = smov 64   ;;  %s1026_s10 = smov 4  }
  0x23   :  { %44 = dma.hbm_to_vmem [thread:$0]  %s1170_s3, 2048, %s39_s24, [#allocation6], %s1025_s1, %s1025_s1, %s1026_s10  }
  0x24   :  { %1015 = dma.done.wait [#allocation3], 4352  }
  0x25   :  { %1016 = vsyncadd [#allocation3], 4294962944 }
  0x26   :  { %1017 = dma.done.wait [#allocation6], 2048  }
  0x27   :  { %1018 = vsyncadd [#allocation6], 4294965248  ;;  %v1027_v0 = vmov 0   ;;  %v874_v1 = vld [vmem:[#allocation2 + $0x4] ss:$8 sps:$4 sm:$0xff]   ;;  %v925_v18 = vld [vmem:[#allocation5 + $0x40] sm:$0xff]   ;;  %v104_v58 = vlaneseq }
  0x28   :  { %873 = vset.pattern.permute.xlu0 %v1027_v0  ;;  %v876_v2 = vld [vmem:[#allocation2] ss:$8 sps:$4 sm:$0xff]   ;;  %288 = vmatprep.subr.bf16.mxu0 %v874_v1  ;;  %v877_v3 = vld [vmem:[#allocation2 + $0x14] ss:$8 sps:$4 sm:$0xff]   ;;  %v879_v4 = vld [vmem:[#allocation2 + $0x10] ss:$8 sps:$4 sm:$0xff]  }
  0x29   :  { %289 = vmatpush1.bf16.msra.mxu0 %v876_v2  ;;  %v880_v5 = vld [vmem:[#allocation2 + $0x24] ss:$8 sps:$4 sm:$0xff]   ;;  %v882_v6 = vld [vmem:[#allocation2 + $0x20] ss:$8 sps:$4 sm:$0xff]   ;;  %v883_v7 = vld [vmem:[#allocation2 + $0x34] ss:$8 sps:$4 sm:$0xff]   ;;  %798 = vmatprep.subr.bf16.mxu1 %v925_v18 }
  0x2a   :  { %290 = vmatprep.subr.bf16.mxu0 %v877_v3  ;;  %v885_v8 = vld [vmem:[#allocation2 + $0x30] ss:$8 sps:$4 sm:$0xff]   ;;  %v886_v9 = vld [vmem:[#allocation2 + $0x44] ss:$8 sps:$4 sm:$0xff]   ;;  %v888_v10 = vld [vmem:[#allocation2 + $0x40] ss:$8 sps:$4 sm:$0xff]  }
  0x2b   :  { %v889_v11 = vld [vmem:[#allocation2 + $0x54] ss:$8 sps:$4 sm:$0xff]   ;;  %v891_v12 = vld [vmem:[#allocation2 + $0x50] ss:$8 sps:$4 sm:$0xff]   ;;  %v892_v13 = vld [vmem:[#allocation2 + $0x64] ss:$8 sps:$4 sm:$0xff]  }
  0x2c   :  { %v63_v14 = vld [vmem:[%s1167_s0 + $0x8] sm:$0xff]  ;;  %v895_v17 = vld [vmem:[#allocation2 + $0x74] ss:$8 sps:$4 sm:$0xff]   ;;  %v897_v19 = vld [vmem:[#allocation2 + $0x70] ss:$8 sps:$4 sm:$0xff]   ;;  %vm284_vm0 = vcmask 130048  }
  0x2d   :  { %291 = vmatpush1.bf16.msra.mxu0 %v879_v4  ;;  %v66_v15 = vpack.c.bf16 %v63_v14, %v63_v14  ;;  %v894_v16 = vld [vmem:[#allocation2 + $0x60] ss:$8 sps:$4 sm:$0xff]   ;;  %v926_v20 = vld [vmem:[#allocation5] sm:$0xff]   ;;  %v898_v21 = vld [vmem:[#allocation2 + $0x84] ss:$8 sps:$4 sm:$0xff]   ;;  %v1028_v57 = vmov 0.0  }
  0x2e   :  { %292 = vmatprep.subr.bf16.mxu0 %v880_v5  ;;  %v927_v22 = vld [vmem:[#allocation5 + $0x48] sm:$0xff]   ;;  %799 = vmatpush3.bf16.msra.mxu1 %v926_v20  ;;  %v929_v24 = vld [vmem:[#allocation5 + $0x50] sm:$0xff]   ;;  %v931_v28 = vld [vmem:[#allocation5 + $0x58] sm:$0xff]   ;;  %v105_v59 = vshrl.u32 %v104_v58, 7  ;;  %vm1029_vm1 = vmmov 0   ;;  %vm671_vm2 = vcmask 523264  }
  0x2f   :  { %320 = vmatprep.mubr.bf16.mxu0 %v66_v15  ;;  %v928_v23 = vld [vmem:[#allocation5 + $0x8] sm:$0xff]   ;;  %800 = vmatprep.subr.bf16.mxu1 %v927_v22  ;;  %v900_v25 = vld [vmem:[#allocation2 + $0x80] ss:$8 sps:$4 sm:$0xff]   ;;  %v904_v30 = vld [vmem:[#allocation2 + $0xa4] ss:$8 sps:$4 sm:$0xff]   ;;  %vm718_vm3 = vcmask 64512  }
  0x30   :  { %v901_v26 = vld [vmem:[#allocation2 + $0x94] ss:$8 sps:$4 sm:$0xff]   ;;  %v930_v27 = vld [vmem:[#allocation5 + $0x10] sm:$0xff]   ;;  %v903_v29 = vld [vmem:[#allocation2 + $0x90] ss:$8 sps:$4 sm:$0xff]   ;;  %v106_v60 = vsub.s32 0, %v105_v59 }
  0x31   :  { %293 = vmatpush1.bf16.msra.mxu0 %v882_v6  ;;  %v932_v31 = vld [vmem:[#allocation5 + $0x18] sm:$0xff]   ;;  %v933_v32 = vld [vmem:[#allocation5 + $0x60] sm:$0xff]   ;;  %v935_v36 = vld [vmem:[#allocation5 + $0x68] sm:$0xff]   ;;  %v110_v62 = vsub.s32 1, %v105_v59 }
  0x32   :  { %294 = vmatprep.subr.bf16.mxu0 %v883_v7  ;;  %801 = vmatpush3.bf16.msra.mxu1 %v928_v23  ;;  %v906_v33 = vld [vmem:[#allocation2 + $0xa0] ss:$8 sps:$4 sm:$0xff]   ;;  %v934_v34 = vld [vmem:[#allocation5 + $0x20] sm:$0xff]   ;;  %v936_v38 = vld [vmem:[#allocation5 + $0x28] sm:$0xff]  }
  0x33   :  { %802 = vmatprep.subr.bf16.mxu1 %v929_v24  ;;  %v907_v35 = vld [vmem:[#allocation2 + $0xb4] ss:$8 sps:$4 sm:$0xff]   ;;  %v909_v37 = vld [vmem:[#allocation2 + $0xb0] ss:$8 sps:$4 sm:$0xff]   ;;  %v910_v39 = vld [vmem:[#allocation2 + $0xc4] ss:$8 sps:$4 sm:$0xff]  }
  0x34   :  { %v912_v40 = vld [vmem:[#allocation2 + $0xc0] ss:$8 sps:$4 sm:$0xff]   ;;  %v913_v41 = vld [vmem:[#allocation2 + $0xd4] ss:$8 sps:$4 sm:$0xff]   ;;  %v915_v42 = vld [vmem:[#allocation2 + $0xd0] ss:$8 sps:$4 sm:$0xff]  }
  0x35   :  { %295 = vmatpush1.bf16.msra.mxu0 %v885_v8  ;;  %v916_v43 = vld [vmem:[#allocation2 + $0xe4] ss:$8 sps:$4 sm:$0xff]   ;;  %v918_v44 = vld [vmem:[#allocation2 + $0xe0] ss:$8 sps:$4 sm:$0xff]   ;;  %v919_v45 = vld [vmem:[#allocation2 + $0xf4] ss:$8 sps:$4 sm:$0xff]  }
  0x36   :  { %296 = vmatprep.subr.bf16.mxu0 %v886_v9  ;;  %803 = vmatpush3.bf16.msra.mxu1 %v930_v27  ;;  %v921_v46 = vld [vmem:[#allocation2 + $0xf0] ss:$8 sps:$4 sm:$0xff]   ;;  %v62_v47 = vld [vmem:[%s1167_s0] sm:$0xff]  ;;  %v939_v55 = vld [vmem:[#allocation5 + $0x78] sm:$0xff]  }
  0x37   :  { %804 = vmatprep.subr.bf16.mxu1 %v931_v28  ;;  %v924_v48 = vld [vmem:[#allocation2 + $0x104] ss:$8 sps:$4 sm:$0xff]   ;;  %v65_v49 = vpack.c.bf16 %v62_v47, %v62_v47  ;;  %v922_v50 = vld [vmem:[#allocation2 + $0x100] ss:$8 sps:$4 sm:$0xff]   ;;  %v64_v51 = vld [vmem:[%s1167_s0 + $0x10] sm:$0xff] }
  0x38   :  { %v67_v52 = vpack.c.bf16 %v64_v51, %v64_v51  ;;  %v937_v53 = vld [vmem:[#allocation5 + $0x70] sm:$0xff]   ;;  %v940_v56 = vld [vmem:[#allocation5 + $0x38] sm:$0xff]   ;;  %v944_v14 = vld [vmem:[%s1172_s5 + $0x18] sm:$0xff]  }
  0x39   :  { %297 = vmatpush1.bf16.msra.mxu0 %v888_v10  ;;  %v938_v54 = vld [vmem:[#allocation5 + $0x30] sm:$0xff]   ;;  %v948_v18 = vld [vmem:[%s1172_s5 + $0x38] sm:$0xff]  }
  0x3a   :  { %298 = vmatprep.subr.bf16.mxu0 %v889_v11  ;;  %805 = vmatpush3.bf16.msra.mxu1 %v932_v31  ;;  %v102_v61 = vld [vmem:[%s1169_s2] sm:$0x3] }
  0x3b   :  { %806 = vmatprep.subr.bf16.mxu1 %v933_v32  ;;  %v107_v63 = vrot.slane %v102_v61, %v106_v60  ;;  %v941_v10 = vld [vmem:[%s1172_s5] sm:$0xff]  }
  0x3c   :  { %v945_v15 = vld [vmem:[%s1172_s5 + $0x20] sm:$0xff]  }
  0x3d   :  { %299 = vmatpush1.bf16.msra.mxu0 %v891_v12  ;;  %v942_v12 = vld [vmem:[%s1172_s5 + $0x8] sm:$0xff]   ;;  %v771_v20 = vld [vmem:[%s1171_s4] ss:$0 sm:$0xff] }
  0x3e   :  { %300 = vmatprep.subr.bf16.mxu0 %v892_v13  ;;  %807 = vmatpush3.bf16.msra.mxu1 %v934_v34  ;;  %v943_v13 = vld [vmem:[%s1172_s5 + $0x10] sm:$0xff]   ;;  %v665_v28 = vld [vmem:[%s1175_s8] sm:$0xff]  ;;  %s1030_s8 = smov [#allocation7]  }
  0x3f   :  { %808 = vmatprep.subr.bf16.mxu1 %v935_v36  ;;  %668 = vperm.xlu0 %873, %v665_v28   ;;  %s726_s19 = sshll.u32 %s1030_s8, 4  ;;  %s727_s19 = int_to_ptr.vmem [resolvable:$true] %s726_s19 }
  0x40   :  { %p998_p3 = scmp.lt.s32.totalorder %s727_s19, %s727_s19 }
  0x41   :  { %301 = vmatpush1.bf16.msra.mxu0 %v894_v16  ;;  %v946_v16 = vld [vmem:[%s1172_s5 + $0x28] sm:$0xff]  }
  0x42   :  { %302 = vmatprep.subr.bf16.mxu0 %v895_v17  ;;  %809 = vmatpush3.bf16.msra.mxu1 %v936_v38  ;;  %v947_v17 = vld [vmem:[%s1172_s5 + $0x30] sm:$0xff]   ;;  %v663_v38 = vld [vmem:[%s1174_s7] sm:$0xf] }
  0x43   :  { %810 = vmatprep.subr.bf16.mxu1 %v937_v53 }
  0x45   :  { %303 = vmatpush1.bf16.msra.mxu0 %v897_v19 }
  0x46   :  { %304 = vmatprep.subr.bf16.mxu0 %v898_v21  ;;  %811 = vmatpush3.bf16.msra.mxu1 %v938_v54 }
  0x47   :  { %812 = vmatprep.subr.bf16.mxu1 %v939_v55 }
  0x49   :  { %305 = vmatpush1.bf16.msra.mxu0 %v900_v25 }
  0x4a   :  { %306 = vmatprep.subr.bf16.mxu0 %v901_v26  ;;  %813 = vmatpush3.bf16.msra.mxu1 %v940_v56 }
  0x4b   :  { %831 = vmatprep.subr.bf16.mxu1 %v1028_v57 }
  0x4d   :  { %307 = vmatpush1.bf16.msra.mxu0 %v903_v29  ;;  %v788_v29 = vld [vmem:[%s1173_s6] ss:$0 sm:$0xff]  ;;  %s993_s6 = scalar_lea.vmem %s727_s19, 128 }
  0x4e   :  { %308 = vmatprep.subr.bf16.mxu0 %v904_v30  ;;  %p994_p2 = scmp.ne.s32.totalorder %s727_s19, %s993_s6  ;;  %p999_p4 = scmp.lt.s32.totalorder %s993_s6, %s993_s6 }
  0x50   :  { %p1000_p5 = por %p999_p4, %p998_p3 }
  0x51   :  { %309 = vmatpush1.bf16.msra.mxu0 %v906_v33 }
  0x52   :  { %310 = vmatprep.subr.bf16.mxu0 %v907_v35  ;;  %p1001_p6 = pnand %p1000_p5, %p994_p2 }
  0x55   :  { %311 = vmatpush1.bf16.msra.mxu0 %v909_v37 }
  0x56   :  { %312 = vmatprep.subr.bf16.mxu0 %v910_v39 }
  0x59   :  { %313 = vmatpush1.bf16.msra.mxu0 %v912_v40 }
  0x5a   :  { %314 = vmatprep.subr.bf16.mxu0 %v913_v41 }
  0x5d   :  { %315 = vmatpush1.bf16.msra.mxu0 %v915_v42 }
  0x5e   :  { %316 = vmatprep.subr.bf16.mxu0 %v916_v43 }
  0x61   :  { %317 = vmatpush1.bf16.msra.mxu0 %v918_v44 }
  0x62   :  { %318 = vmatprep.subr.bf16.mxu0 %v919_v45 }
  0x65   :  { %319 = vmatpush1.bf16.msra.mxu0 %v921_v46 }
  0x66   :  { %329 = vmatprep.subr.bf16.mxu0 %v924_v48 }
  0x68   :  { %321 = vmatmul.mubr.bf16.vlgmr.msra.gmra.mrb[0].mxu0 %v65_v49 }
  0x69   :  { %330 = vmatpush1.bf16.msra.mxu0 %v922_v50  ;;  %361 = vmatprep.mubr.bf16.mxu0 %v1027_v0  ;;  %v111_v0 = vrot.slane %v102_v61, %v110_v62 }
  0x74   :  { %770 = vmatmul.mubr.msk.bf16.vlgmr.msra.gmra.mrb[0].mxu0 %vm284_vm0, %v67_v52 }
  0xbe   :  { %v669_v39 = vpop.permute.xlu0 %668 }
 0x147   :  { %v363_v1 = vpop.f32.mrb[0].mxu0 }
 0x148   :  { %v857_v2 = vadd.f32 %v363_v1, %v107_v63  ;;  %v365_v3 = vpop.f32.mrb[1].mxu0 }
 0x149   :  { %v858_v4 = vadd.f32 %v365_v3, %v111_v0  ;;  %v367_v5 = vpop.f32.mrb[2].mxu0 }
 0x14a   :  { %v370_v6 = vmax.f32 %v857_v2, 0.0  ;;  %v368_v7 = vpop.f32.mrb[3].mxu0 }
 0x14b   :  { %v371_v8 = vmax.f32 %v858_v4, 0.0 }
 0x14c   :  { %v372_v11 = vpack.c.bf16 %v370_v6, %v370_v6 }
 0x14d   :  { %v373_v9 = vpack.c.bf16 %v371_v8, %v371_v8 }
 0x14f   :  { %541 = vmatprep.mubr.bf16.mxu1 %v373_v9 }
 0x150   :  { %542 = vmatmul.mubr.bf16.vlgmr.msra.gmra.mrb[0].mxu1 %v372_v11 }
 0x151   :  { %832 = vmatpush3.bf16.msra.mxu1 %v941_v10  ;;  %847 = vmatprep.mubr.msk.bf16.mxu1 %vm1029_vm1, %v1028_v57 }
 0x152   :  { %833 = vmatprep.subr.bf16.mxu1 %v1028_v57 }
 0x155   :  { %834 = vmatpush3.bf16.msra.mxu1 %v942_v12 }
 0x156   :  { %835 = vmatprep.subr.bf16.mxu1 %v1028_v57 }
 0x159   :  { %836 = vmatpush3.bf16.msra.mxu1 %v943_v13 }
 0x15a   :  { %837 = vmatprep.subr.bf16.mxu1 %v1028_v57 }
 0x15d   :  { %838 = vmatpush3.bf16.msra.mxu1 %v944_v14 }
 0x15e   :  { %839 = vmatprep.subr.bf16.mxu1 %v1028_v57 }
 0x161   :  { %840 = vmatpush3.bf16.msra.mxu1 %v945_v15 }
 0x162   :  { %841 = vmatprep.subr.bf16.mxu1 %v1028_v57 }
 0x165   :  { %842 = vmatpush3.bf16.msra.mxu1 %v946_v16 }
 0x166   :  { %843 = vmatprep.subr.bf16.mxu1 %v1028_v57 }
 0x169   :  { %844 = vmatpush3.bf16.msra.mxu1 %v947_v17 }
 0x16a   :  { %845 = vmatprep.subr.bf16.mxu1 %v1028_v57 }
 0x16d   :  { %846 = vmatpush3.bf16.msra.mxu1 %v948_v18 }
 0x16e   :  { %851 = vmatprep.subr.bf16.mxu1 %v1028_v57 }
 0x223   :  { %v814_v19 = vpop.f32.mrb[0].mxu1 }
 0x224   :  { %v815_v21 = vpop.f32.mrb[1].mxu1 }
 0x225   :  { %v816_v22 = vadd.f32 %v815_v21, %v814_v19  ;;  %v817_v23 = vpop.f32.mrb[2].mxu1 }
 0x226   :  { %v818_v24 = vpop.f32.mrb[3].mxu1 }
 0x227   :  { %v544_v25 = vadd.f32 %v816_v22, %v771_v20 }
 0x229   :  { %v549_v26 = vmax.f32 %v544_v25, 0.0 }
 0x22b   :  { %v550_v27 = vpack.c.bf16 %v549_v26, %v549_v26 }
 0x22d   :  { %848 = vmatmul.mubr.bf16.vlgmr.msra.gmra.mrb[4].mxu1 %v550_v27 }
 0x22e   :  { %853 = vmatprep.mubr.msk.bf16.mxu1 %vm1029_vm1, %v1028_v57 }
 0x300   :  { %v656_v30 = vpop.f32.mrb[4].mxu1 }
 0x301   :  { %v657_v31 = vadd.f32 %v788_v29, %v656_v30  ;;  %v849_v32 = vpop.f32.mrb[5].mxu1 }
 0x302   :  { %v659_v33 = vpop.f32.mrb[6].mxu1 }
 0x303   :  { %v662_v34 = vmax.f32 %v657_v31, 0.0  ;;  %v850_v35 = vpop.f32.mrb[7].mxu1 }
 0x305   :  { %v664_v36 = vpack.c.bf16 %v662_v34, %v662_v34 }
 0x307   :  { %v676_v37 = vsel %vm671_vm2, %v664_v36, 0 }
 0x308   :  { %852 = vmatpush3.bf16.xpose.msra.mxu1 %v676_v37 }
 0x30f   :  { %854 = vmatmul.mubr.msk.bf16.vlgmr.msra.gmra.mrb[8].mxu1 %vm671_vm2, %v663_v38 }
 0x3e2   :  { %v712_v40 = vpop.f32.mrb[8].mxu1 }
 0x3e3   :  { %v713_v41 = vadd.f32 %v712_v40, %v669_v39  ;;  %v855_v42 = vpop.f32.mrb[9].mxu1 }
 0x3e4   :  { %v715_v43 = vpop.f32.mrb[10].mxu1 }
 0x3e5   :  { %v856_v44 = vpop.f32.mrb[11].mxu1  ;;  %719 = vst.msk [vmem:[#allocation7] sm:$0xff] %vm718_vm3, %v713_v41 }
 0x3e6   :  { %1004 = shalt.err (!%p1001_p6)
}
 0x3e7   :  { %s1005_s21 = scalar_lea.hbm %s1176_s9, 128 }
 0x3e8   :  { %p1006_p7 = scmp.ne.s32.totalorder %s1176_s9, %s1005_s21  ;;  %p1009_p8 = scmp.lt.u32.totalorder %s1005_s21, %s1176_s9 }
 0x3ea   :  { %p1011_p9 = pnand %p1009_p8, %p1006_p7 }
 0x3ec   :  { %1014 = shalt.err (!%p1011_p9)
}
 0x3ed   :  { %729 = dma.vmem_to_hbm [thread:$0]  %s727_s19, 128, %s1176_s9, [#allocation4]  }
 0x3ee   :  { %1019 = dma.done.wait [#allocation4], 128  }
 0x3ef   :  { %1020 = vsyncadd [#allocation4], 4294967168 }
 0x3f0   :  { %733 = vsyncpa [#allocation3], 1 }
 0x3f1   :  { %734 = vsyncpa [#allocation6], 1 }
 0x3f2   :  { %735 = vsyncpa [#allocation4], 1 }

</bundles_post_ra>
